<compile_context>
chip_gen: v6e
topology: v6e:2x2x1
jax: 0.10.0
libtpu: 0.0.40
codegen_flags: <defaults>
</compile_context>

<pallas_src>
import functools

import jax
import jax.numpy as jnp
from jax.experimental import pallas as pl
from jax.experimental.pallas import tpu as pltpu


def _round_up(n, m):
    return ((n + m - 1) // m) * m


def _value_net_kernel(xT_ref, p_ref, out_ref, *, num_inputs, hidden):
    # Static column offsets into the packed parameter slab (hidden, num_inputs+hidden+4).
    o_w1 = 0
    o_b1 = o_w1 + num_inputs
    o_w2 = o_b1 + 1
    o_b2 = o_w2 + hidden
    o_w3 = o_b2 + 1
    o_b3 = o_w3 + 1

    p = p_ref[...]                     # single load of the tiny packed slab
    w1T = p[:, o_w1:o_b1]              # (hidden, num_inputs)  == W1^T
    b1 = p[:, o_b1:o_b1 + 1]           # (hidden, 1)
    w2T = p[:, o_w2:o_b2]              # (hidden, hidden)      == W2^T
    b2 = p[:, o_b2:o_b2 + 1]           # (hidden, 1)
    w3 = p[:, o_w3:o_w3 + 1]           # (hidden, 1)           == W3 column
    b3 = p[0:1, o_b3:o_b3 + 1]         # (1, 1) scalar bias

    xT = xT_ref[...]                   # (num_inputs, TB) -- batch on the lane axis

    # h1^T = relu(W1^T x^T + b1)
    h1 = jnp.dot(w1T, xT, preferred_element_type=jnp.float32) + b1
    h1 = jnp.maximum(h1, 0.0)
    # h2^T = relu(W2^T h1^T + b2)
    h2 = jnp.dot(w2T, h1, preferred_element_type=jnp.float32) + b2
    h2 = jnp.maximum(h2, 0.0)
    # v^T = w3^T h2^T + b3: N=1, so use VPU multiply + sublane reduce (skip the MXU).
    v = jnp.sum(h2 * w3, axis=0, keepdims=True) + b3     # (1, TB), lane-dense
    out_ref[...] = v.reshape(out_ref.shape).astype(out_ref.dtype)


def pack_params(params):
    """Concatenate w1,b1,w2,b2,w3,b3 into one (hidden, num_inputs+hidden+4) f32 slab."""
    w1, b1 = params["w1"], params["b1"]   # (in, H), (H,)
    w2, b2 = params["w2"], params["b2"]   # (H, H), (H,)
    w3, b3 = params["w3"], params["b3"]   # (H, 1), (1,)
    hidden = w1.shape[1]
    cols = [
        w1.T,                                   # W1^T: (H, in)
        b1.reshape(hidden, 1),
        w2.T,                                   # W2^T: (H, H)
        b2.reshape(hidden, 1),
        w3.reshape(hidden, 1),                  # W3 column
        jnp.full((hidden, 1), b3.reshape(())),  # b3 broadcast into a column
    ]
    return jnp.concatenate(cols, axis=1).astype(jnp.float32)


def vpg_value_net_forward(x, params, *, max_block_b=512):
    """x: (B, num_inputs) f32; params dict of w1,b1,w2,b2,w3,b3 (weights stored (in, out))."""
    B, num_inputs = x.shape
    hidden = params["w1"].shape[1]
    p_cols = num_inputs + hidden + 4

    # Batch tile: lane-aligned (multiple of 128), capped so large rollout batches pipeline
    # through VMEM instead of loading everything at once.
    TB = min(max_block_b, _round_up(B, 128))
    G = pl.cdiv(B, TB)
    B_pad = G * TB

    # Transpose so the batch lands on the lane axis; zero-pad to a tile multiple.
    xT = jnp.zeros((num_inputs, B_pad), jnp.float32).at[:, :B].set(
        x.T.astype(jnp.float32))
    packed = pack_params(params)

    kernel = functools.partial(_value_net_kernel, num_inputs=num_inputs, hidden=hidden)

    out = pl.pallas_call(
        kernel,
        out_shape=jax.ShapeDtypeStruct((G, 1, TB), jnp.float32),
        grid=(G,),
        in_specs=[
            # x tile: (num_inputs, TB), marches along the batch (lane) axis.
            pl.BlockSpec((num_inputs, TB), lambda i: (0, i)),
            # packed params: constant block index -> single DMA, stays VMEM-resident.
            pl.BlockSpec((hidden, p_cols), lambda i: (0, 0)),
        ],
        # lane-dense output tile (1, 1, TB) -- avoids masked width-1 column stores.
        out_specs=pl.BlockSpec((1, 1, TB), lambda i: (i, 0, 0)),
        compiler_params=pltpu.CompilerParams(
            dimension_semantics=("parallel",),   # megacore-shardable batch axis
        ),
    )(xT, packed)

    # (G, 1, TB) -> (B, 1)
    return out.reshape(B_pad)[:B].reshape(B, 1)


def init_params(key, num_inputs, hidden_size):
    """Deterministic init mimicking PyTorch nn.Linear default (uniform +/- 1/sqrt(fan_in)).
    Weights stored as (in_features, out_features)."""
    ks = jax.random.split(key, 6)

    def lin(kw, kb, fan_in, fan_out):
        bound = 1.0 / jnp.sqrt(jnp.array(fan_in, jnp.float32))
        w = jax.random.uniform(kw, (fan_in, fan_out), jnp.float32, -bound, bound)
        b = jax.random.uniform(kb, (fan_out,), jnp.float32, -bound, bound)
        return w, b

    w1, b1 = lin(ks[0], ks[1], num_inputs, hidden_size)
    w2, b2 = lin(ks[2], ks[3], hidden_size, hidden_size)
    w3, b3 = lin(ks[4], ks[5], hidden_size, 1)
    return {"w1": w1, "b1": b1, "w2": w2, "b2": b2, "w3": w3, "b3": b3}


if __name__ == "__main__":
    num_inputs = 4      # e.g. CartPole observation dim
    hidden_size = 32
    batch = 8

    key = jax.random.PRNGKey(0)
    k_params, k_x = jax.random.split(key)
    params = init_params(k_params, num_inputs, hidden_size)
    x = jax.random.normal(k_x, (batch, num_inputs), jnp.float32)

    value = vpg_value_net_forward(x, params)
    jax.block_until_ready(value)

    # Pure-JAX reference check of the same math.
    h1 = jnp.maximum(x @ params["w1"] + params["b1"], 0.0)
    h2 = jnp.maximum(h1 @ params["w2"] + params["b2"], 0.0)
    ref = h2 @ params["w3"] + params["b3"]
    assert value.shape == (batch, 1)
    assert jnp.allclose(value, ref, atol=1e-5, rtol=1e-5)

    print("KERNEL_OK")
</pallas_src>

<mosaic_0001>
module attributes {stable_mosaic.version = 11 : i64} {
  func.func @_value_net_kernel(%arg0: i32, %arg1: memref<4x128xf32, #tpu.memory_space<vmem>>, %arg2: memref<32x40xf32, #tpu.memory_space<vmem>>, %arg3: memref<1x1x128xf32, #tpu.memory_space<vmem>>) attributes {dimension_semantics = [#tpu.dimension_semantics<parallel>], iteration_bounds = array<i64: 1>, scalar_prefetch = 0 : i64, scratch_operands = 0 : i64, tpu.core_type = #tpu.core_type<tc>, window_params = [{transform_indices = @transform_0, window_bounds = array<i64: 4, 128>}, {pipeline_mode = #tpu.pipeline_mode<synchronous>, transform_indices = @transform_1, window_bounds = array<i64: 32, 40>}, {transform_indices = @transform_2, window_bounds = array<i64: 1, 1, 128>}]} {
    %c0 = arith.constant 0 : index
    %c0_0 = arith.constant 0 : index
    %0 = vector.load %arg2[%c0, %c0_0] : memref<32x40xf32, #tpu.memory_space<vmem>>, vector<32x40xf32>
    %1 = vector.extract_strided_slice %0 {offsets = [0, 0], sizes = [32, 4], strides = [1, 1]} : vector<32x40xf32> to vector<32x4xf32>
    %2 = vector.extract_strided_slice %0 {offsets = [0, 4], sizes = [32, 1], strides = [1, 1]} : vector<32x40xf32> to vector<32x1xf32>
    %3 = vector.extract_strided_slice %0 {offsets = [0, 5], sizes = [32, 32], strides = [1, 1]} : vector<32x40xf32> to vector<32x32xf32>
    %4 = vector.extract_strided_slice %0 {offsets = [0, 37], sizes = [32, 1], strides = [1, 1]} : vector<32x40xf32> to vector<32x1xf32>
    %5 = vector.extract_strided_slice %0 {offsets = [0, 38], sizes = [32, 1], strides = [1, 1]} : vector<32x40xf32> to vector<32x1xf32>
    %6 = vector.extract_strided_slice %0 {offsets = [0, 39], sizes = [1, 1], strides = [1, 1]} : vector<32x40xf32> to vector<1x1xf32>
    %c0_1 = arith.constant 0 : index
    %c0_2 = arith.constant 0 : index
    %7 = vector.load %arg1[%c0_1, %c0_2] : memref<4x128xf32, #tpu.memory_space<vmem>>, vector<4x128xf32>
    %cst = arith.constant dense<0.000000e+00> : vector<32x128xf32>
    %8 = tpu.matmul %1, %7, %cst {dimension_numbers = #tpu.dot_dimension_numbers<[1], [0], [0], [1], [0, 0, 1, 1], [], []>} : vector<32x4xf32>, vector<4x128xf32>, vector<32x128xf32> -> vector<32x128xf32>
    %9 = vector.broadcast %2 : vector<32x1xf32> to vector<32x128xf32>
    %10 = arith.addf %8, %9 : vector<32x128xf32>
    %cst_3 = arith.constant 0.000000e+00 : f32
    %11 = vector.broadcast %cst_3 : f32 to vector<32x128xf32>
    %12 = arith.maximumf %10, %11 : vector<32x128xf32>
    %cst_4 = arith.constant dense<0.000000e+00> : vector<32x128xf32>
    %13 = tpu.matmul %3, %12, %cst_4 {dimension_numbers = #tpu.dot_dimension_numbers<[1], [0], [0], [1], [0, 0, 1, 1], [], []>} : vector<32x32xf32>, vector<32x128xf32>, vector<32x128xf32> -> vector<32x128xf32>
    %14 = vector.broadcast %4 : vector<32x1xf32> to vector<32x128xf32>
    %15 = arith.addf %13, %14 : vector<32x128xf32>
    %cst_5 = arith.constant 0.000000e+00 : f32
    %16 = vector.broadcast %cst_5 : f32 to vector<32x128xf32>
    %17 = arith.maximumf %15, %16 : vector<32x128xf32>
    %18 = vector.broadcast %5 : vector<32x1xf32> to vector<32x128xf32>
    %19 = arith.mulf %17, %18 : vector<32x128xf32>
    %cst_6 = arith.constant dense<0.000000e+00> : vector<128xf32>
    %20 = vector.multi_reduction <add>, %19, %cst_6 [0] : vector<32x128xf32> to vector<128xf32>
    %21 = vector.shape_cast %20 : vector<128xf32> to vector<1x128xf32>
    %22 = vector.broadcast %6 : vector<1x1xf32> to vector<1x128xf32>
    %23 = arith.addf %21, %22 : vector<1x128xf32>
    %24 = vector.shape_cast %23 : vector<1x128xf32> to vector<1x1x128xf32>
    %c0_7 = arith.constant 0 : index
    %c0_8 = arith.constant 0 : index
    %c0_9 = arith.constant 0 : index
    %25 = vector.load %arg3[%c0_7, %c0_8, %c0_9] : memref<1x1x128xf32, #tpu.memory_space<vmem>>, vector<1x1x128xf32>
    tpu.vector_store %arg3[%c0_7, %c0_8, %c0_9], %24 {strides = array<i32>} : memref<1x1x128xf32, #tpu.memory_space<vmem>>, vector<1x1x128xf32>,
    return
  }
  func.func @transform_0(%arg0: i32) -> (i32, i32) {
    %c0_i32 = arith.constant 0 : i32
    %c0_i32_0 = arith.constant 0 : i32
    return %c0_i32, %arg0 : i32, i32
  }
  func.func @transform_1(%arg0: i32) -> (i32, i32) {
    %c0_i32 = arith.constant 0 : i32
    %c0_i32_0 = arith.constant 0 : i32
    %c0_i32_1 = arith.constant 0 : i32
    return %c0_i32, %c0_i32_0 : i32, i32
  }
  func.func @transform_2(%arg0: i32) -> (i32, i32, i32) {
    %c0_i32 = arith.constant 0 : i32
    %c0_i32_0 = arith.constant 0 : i32
    %c0_i32_1 = arith.constant 0 : i32
    return %arg0, %c0_i32, %c0_i32_0 : i32, i32, i32
  }
}

</mosaic_0001>

<bundles_post_ra>
// kernel: tpu_custom_call.1
= control target key start
LH: loop header
LB: loop body
LE: loop exit
PB: predicated region body
PF: predicated region fallthrough
CT: control target
= control target key end

     0   :  { %7 = vsyncpa [#allocation3], 0  ;;  %s511_s0 = inlined_call_operand.hbm [shape: f32[4,128], index: 0, kind: input, shape index: {}]   ;;  %s512_s1 = inlined_call_operand.hbm [shape: f32[32,40], index: 1, kind: input, shape index: {}]   ;;  %s513_s2 = inlined_call_operand.hbm [shape: f32[1,1,128], index: 2, kind: output, shape index: {}]  }
   0x1   :  { %8 = vsyncpa [#allocation6], 0 }
   0x2   :  { %9 = vsyncpa [#allocation4], 0  ;;  %s473_s9 = smov [#allocation2]   ;;  %s474_s11 = smov [#allocation5]  }
   0x3   :  { %s16_s10 = sshll.u32 %s473_s9, 4  ;;  %s25_s12 = sshll.u32 %s474_s11, 4  ;;  %s17_s10 = int_to_ptr.vmem [resolvable:$true] %s16_s10  ;;  %s26_s12 = int_to_ptr.vmem [resolvable:$true] %s25_s12 }
   0x4   :  { %s415_s13 = scalar_lea.vmem %s17_s10, 64  ;;  %p420_p1 = scmp.lt.s32.totalorder %s17_s10, %s17_s10 }
   0x5   :  { %p416_p0 = scmp.ne.s32.totalorder %s17_s10, %s415_s13  ;;  %p421_p2 = scmp.lt.s32.totalorder %s415_s13, %s415_s13 }
   0x7   :  { %p422_p3 = por %p421_p2, %p420_p1 }
   0x9   :  { %p423_p4 = pnand %p422_p3, %p416_p0 }
   0xb   :  { %426 = shalt.err (!%p423_p4)
}
   0xc   :  { %19 = dma.hbm_to_vmem [thread:$0]  %s511_s0, 64, %s17_s10, [#allocation3]  }
   0xd   :  { %s435_s16 = scalar_lea.vmem %s26_s12, 512  ;;  %p440_p6 = scmp.lt.s32.totalorder %s26_s12, %s26_s12 }
   0xe   :  { %p436_p5 = scmp.ne.s32.totalorder %s26_s12, %s435_s16  ;;  %p441_p7 = scmp.lt.s32.totalorder %s435_s16, %s435_s16 }
  0x10   :  { %p442_p8 = por %p441_p7, %p440_p6 }
  0x12   :  { %p443_p9 = pnand %p442_p8, %p436_p5 }
  0x14   :  { %446 = shalt.err (!%p443_p9)
}
  0x15   :  { %s475_s17 = smov 128   ;;  %s476_s18 = smov 8  }
  0x16   :  { %31 = dma.hbm_to_vmem [thread:$0]  %s512_s1, 512, %s26_s12, [#allocation6], %s475_s17, %s475_s17, %s476_s18  }
  0x17   :  { %467 = dma.done.wait [#allocation3], 64  }
  0x18   :  { %468 = vsyncadd [#allocation3], 4294967232 }
  0x19   :  { %469 = dma.done.wait [#allocation6], 512  }
  0x1a   :  { %470 = vsyncadd [#allocation6], 4294966784  ;;  %v477_v0 = vmov 4   ;;  %vm72_vm0 = vcmask 1043456   ;;  %vm63_vm1 = vcmask 31744   ;;  %v38_v2 = vld [vmem:[#allocation5] sm:$0xff] }
  0x1b   :  { %401 = vset.pattern.permute.xlu1 %v477_v0  ;;  %400 = vset.pattern.permute.xlu0 %v477_v0  ;;  %v42_v1 = vld [vmem:[#allocation2] sm:$0xf]  ;;  %v39_v3 = vld [vmem:[#allocation5 + $0x8] sm:$0xff]  ;;  %v40_v4 = vld [vmem:[#allocation5 + $0x10] sm:$0xff]  ;;  %s478_s0 = smov 123   ;;  %v479_v6 = vmov 37  }
  0x1c   :  { %360 = vmatprep.subr.msk.mxu0 %vm72_vm0, %v42_v1  ;;  %362 = vmatprep.mubr.msk.f32.mxu0 %vm63_vm1, %v38_v2  ;;  %v41_v5 = vld [vmem:[#allocation5 + $0x18] sm:$0xff]  ;;  %v480_v7 = vmov 38   ;;  %v481_v8 = vmov 39   ;;  %vm189_vm2 = vcmask 261120   ;;  %s482_s1 = smov [#allocation7]  }
  0x1d   :  { %361 = vmatpush3.msk.msra.mxu0 %vm72_vm0, %v42_v1  ;;  %60 = vperm.xlu0 %400, %v41_v5   ;;  %s328_s21 = sshll.u32 %s482_s1, 4  ;;  %s329_s21 = int_to_ptr.vmem [resolvable:$true] %s328_s21 }
  0x1e   :  { %363 = vmatmul.mubr.msk.f32.vlgmr.msra.gmra.mxu0 %vm63_vm1, %v39_v3  ;;  %50 = vperm.xlu1 %401, %v39_v3   ;;  %s447_s22 = scalar_lea.vmem %s329_s21, 16  ;;  %s451_s23 = scalar_lea.vmem %s329_s21, 32 }
  0x1f   :  { %365 = vmatprep.mubr.msk.f32.mxu0 %vm63_vm1, %v40_v4  ;;  %p448_p10 = scmp.ne.s32.totalorder %s329_s21, %s447_s22  ;;  %p452_p11 = scmp.lt.s32.totalorder %s329_s21, %s329_s21 }
  0x20   :  { %p453_p12 = scmp.lt.s32.totalorder %s451_s23, %s447_s22 }
  0x21   :  { %55 = vperm.xlu0 %400, %v40_v4  }
  0x22   :  { %366 = vmatmul.mubr.msk.f32.gmra.mxu0 %vm63_vm1, %v41_v5  ;;  %45 = vperm.xlu1 %401, %v38_v2   ;;  %p454_p13 = por %p453_p12, %p452_p11 }
  0x24   :  { %p455_p0 = pnand %p454_p13, %p448_p10 }
  0x25   :  { %181 = vrot.lane.b32.xlu0 %v38_v2, %s478_s0 }
  0x26   :  { %183 = vrot.lane.b32.xlu1 %v39_v3, %s478_s0  ;;  %402 = vset.pattern.permute.xlu0 %v479_v6 }
  0x27   :  { %403 = vset.pattern.permute.xlu1 %v479_v6 }
  0x29   :  { %185 = vrot.lane.b32.xlu0 %v40_v4, %s478_s0 }
  0x2a   :  { %187 = vrot.lane.b32.xlu1 %v41_v5, %s478_s0 }
  0x2d   :  { %166 = vperm.xlu0 %402, %v38_v2  }
  0x2e   :  { %170 = vperm.xlu1 %403, %v39_v3  }
  0x31   :  { %178 = vperm.xlu0 %402, %v41_v5  }
  0x32   :  { %174 = vperm.xlu1 %403, %v40_v4  }
  0x35   :  { %405 = vset.pattern.permute.xlu0 %v480_v7 }
  0x36   :  { %404 = vset.pattern.permute.xlu1 %v480_v7  ;;  %292 = vperm.xlu0 %405, %v39_v3  }
  0x37   :  { %288 = vperm.xlu1 %404, %v38_v2  }
  0x3a   :  { %406 = vset.pattern.permute.xlu0 %v481_v8 }
  0x3b   :  { %296 = vperm.xlu1 %404, %v40_v4   ;;  %317 = vperm.xlu0 %406, %v38_v2  }
  0x3f   :  { %300 = vperm.xlu1 %404, %v41_v5  }
  0x98   :  { %v61_v9 = vpop.permute.xlu0 %60 }
  0x99   :  { %v51_v13 = vpop.permute.xlu1 %50 }
  0x9c   :  { %v56_v10 = vpop.permute.xlu0 %55 }
  0x9d   :  { %v46_v16 = vpop.permute.xlu1 %45 }
  0xa0   :  { %v182_v11 = vpop.permute.xlu0 %181 }
  0xa1   :  { %376 = vmatprep.mubr.msk.f32.mxu0 %vm189_vm2, %v182_v11  ;;  %v184_v23 = vpop.permute.xlu1 %183 }
  0xa4   :  { %v186_v12 = vpop.permute.xlu0 %185 }
  0xa5   :  { %379 = vmatprep.mubr.msk.f32.mxu1 %vm189_vm2, %v186_v12  ;;  %v188_v28 = vpop.permute.xlu1 %187 }
  0xa8   :  { %v167_v31 = vpop.permute.xlu0 %166 }
  0xa9   :  { %v171_v29 = vpop.permute.xlu1 %170 }
  0xac   :  { %v179_v33 = vpop.permute.xlu0 %178 }
  0xad   :  { %v175_v30 = vpop.permute.xlu1 %174 }
  0xb1   :  { %v293_v44 = vpop.permute.xlu0 %292 }
  0xb2   :  { %v289_v32 = vpop.permute.xlu1 %288 }
  0xb6   :  { %v297_v43 = vpop.permute.xlu1 %296  ;;  %v318_v61 = vpop.permute.xlu0 %317 }
  0xba   :  { %v301_v52 = vpop.permute.xlu1 %300 }
  0xde   :  { %v364_v14 = vpop.f32.mrf.mxu0 }
  0xdf   :  { %v148_v20 = vadd.f32 %v364_v14, %v51_v13 }
  0xe0   :  { %v142_v15 = vpop.f32.mrf.mxu0 }
  0xe1   :  { %v143_v24 = vadd.f32 %v142_v15, %v46_v16  ;;  %v162_v26 = vmax.f32 %v148_v20, 0.0 }
  0xe2   :  { %v367_v17 = vpop.f32.mrf.mxu0 }
  0xe3   :  { %v158_v18 = vadd.f32 %v367_v17, %v61_v9  ;;  %v161_v27 = vmax.f32 %v143_v24, 0.0 }
  0xe4   :  { %v152_v19 = vpop.f32.mrf.mxu0 }
  0xe5   :  { %v164_v21 = vmax.f32 %v158_v18, 0.0  ;;  %v153_v22 = vadd.f32 %v152_v19, %v56_v10 }
  0xe7   :  { %v163_v25 = vmax.f32 %v153_v22, 0.0  ;;  %368 = vmatprep.subr.mxu0 %v164_v21  ;;  %382 = vmatprep.subr.mxu1 %v164_v21 }
  0xe8   :  { %369 = vmatpush3.msra.mxu0 %v164_v21  ;;  %386 = vmatpush3.msra.mxu1 %v164_v21 }
  0xe9   :  { %370 = vmatprep.subr.mxu0 %v163_v25  ;;  %383 = vmatprep.subr.mxu1 %v163_v25 }
  0xea   :  { %371 = vmatpush3.msra.mxu0 %v163_v25  ;;  %387 = vmatpush3.msra.mxu1 %v163_v25 }
  0xeb   :  { %372 = vmatprep.subr.mxu0 %v162_v26  ;;  %384 = vmatprep.subr.mxu1 %v162_v26 }
  0xec   :  { %373 = vmatpush3.msra.mxu0 %v162_v26  ;;  %388 = vmatpush3.msra.mxu1 %v162_v26 }
  0xed   :  { %374 = vmatprep.subr.mxu0 %v161_v27  ;;  %385 = vmatprep.subr.mxu1 %v161_v27 }
  0xee   :  { %375 = vmatpush3.msra.mxu0 %v161_v27  ;;  %389 = vmatpush3.msra.mxu1 %v161_v27 }
  0xef   :  { %377 = vmatmul.mubr.msk.f32.vlgmr.msra.gmra.mxu0 %vm189_vm2, %v184_v23  ;;  %380 = vmatmul.mubr.msk.f32.vlgmr.msra.gmra.mxu1 %vm189_vm2, %v188_v28 }
 0x1af   :  { %v378_v34 = vpop.f32.mrf.mxu0  ;;  %v381_v35 = vpop.f32.mrf.mxu1 }
 0x1b0   :  { %v270_v36 = vadd.f32 %v378_v34, %v171_v29  ;;  %v280_v40 = vadd.f32 %v381_v35, %v179_v33 }
 0x1b1   :  { %v264_v37 = vpop.f32.mrf.mxu0  ;;  %v274_v38 = vpop.f32.mrf.mxu1 }
 0x1b2   :  { %v284_v39 = vmax.f32 %v270_v36, 0.0  ;;  %v265_v41 = vadd.f32 %v264_v37, %v167_v31  ;;  %v275_v42 = vadd.f32 %v274_v38, %v175_v30  ;;  %v286_v47 = vmax.f32 %v280_v40, 0.0 }
 0x1b4   :  { %v283_v45 = vmax.f32 %v265_v41, 0.0  ;;  %v285_v46 = vmax.f32 %v275_v42, 0.0  ;;  %v304_v49 = vmul.f32 %v293_v44, %v284_v39  ;;  %v306_v53 = vmul.f32 %v301_v52, %v286_v47 }
 0x1b6   :  { %v303_v48 = vmul.f32 %v289_v32, %v283_v45  ;;  %v305_v50 = vmul.f32 %v297_v43, %v285_v46 }
 0x1b8   :  { %v307_v51 = vadd.f32 %v304_v49, %v303_v48 }
 0x1ba   :  { %v308_v54 = vadd.f32 %v307_v51, %v305_v50 }
 0x1bc   :  { %v309_v55 = vadd.f32 %v308_v54, %v306_v53 }
 0x1be   :  { %v310_v56 = vrot.slane %v309_v55, 4 }
 0x1c0   :  { %v311_v57 = vadd.f32 %v310_v56, %v309_v55 }
 0x1c2   :  { %v312_v58 = vrot.slane %v311_v57, 2 }
 0x1c4   :  { %v313_v59 = vadd.f32 %v312_v58, %v311_v57 }
 0x1c6   :  { %v314_v60 = vrot.slane %v313_v59, 1 }
 0x1c8   :  { %v315_v62 = vadd.f32 %v314_v60, %v313_v59 }
 0x1ca   :  { %v320_v63 = vadd.f32 %v318_v61, %v315_v62 }
 0x1cc   :  { %321 = vst [vmem:[#allocation7] sm:$0x1] %v320_v63 }
 0x1cd   :  { %458 = shalt.err (!%p455_p0)
}
 0x1ce   :  { %331 = dma.vmem_to_hbm [thread:$0]  %s329_s21, 16, %s513_s2, [#allocation4]  }
 0x1cf   :  { %471 = dma.done.wait [#allocation4], 16  }
 0x1d0   :  { %472 = vsyncadd [#allocation4], 4294967280 }
 0x1d1   :  { %335 = vsyncpa [#allocation3], 1 }
 0x1d2   :  { %336 = vsyncpa [#allocation6], 1 }
 0x1d3   :  { %337 = vsyncpa [#allocation4], 1 }

</bundles_post_ra>
